<compile_context>
chip_gen: v5e
topology: v5e:2x2
jax: 0.10.0
libtpu: 0.0.40
codegen_flags: <defaults>
</compile_context>

<pallas_src>
import functools
import math

import jax
import jax.numpy as jnp
import numpy as np
from jax.experimental import pallas as pl
from jax.experimental.pallas import tpu as pltpu


def _attn_kernel(rows_ref, cols_ref, vals_ref, o_ref, attn_ref, *,
                 masked, scale, tile, compute_dtype):
    """Grid = (batch, head, seq_tile); every grid point is independent.

    rows_ref : (1, 1, tile, E_head)  projected Q rows (unmasked) / K rows ('^')
    cols_ref : (1, 1, T,    E_head)  projected K (unmasked) / Q ('^')
    vals_ref : (1, 1, T,    E_head)  projected V
    o_ref    : (1, 1, tile, E_head)  attention-output rows
    attn_ref : (1, 1, tile, T)       attention-weight rows
    """
    rows = rows_ref[0, 0] * scale          # fold 1/sqrt(d) into the small operand
    cols = cols_ref[0, 0]

    if compute_dtype is not None:
        rows = rows.astype(compute_dtype)
        cols = cols.astype(compute_dtype)

    # s[i, j] = rows[i] . cols[j] — contract the last dims of both operands
    # (native MXU pattern, no in-kernel transpose).
    s = jax.lax.dot_general(rows, cols, (((1,), (1,)), ((), ())),
                            preferred_element_type=jnp.float32)      # (tile, T)

    if masked == '^':
        # Transposed-scores layout: row = GLOBAL key index, col = query index.
        # The reference masks scores[q, k] for k > q, i.e. here row > col.
        r = (jax.lax.broadcasted_iota(jnp.int32, s.shape, 0)
             + pl.program_id(2) * tile)
        c = jax.lax.broadcasted_iota(jnp.int32, s.shape, 1)
        s = jnp.where(r > c, jnp.float32(-10000000.0), s)

    # Numerically-stable softmax over the last axis: one (tile, 1) exact
    # reciprocal + a broadcast VPU multiply (no O(tile*T) divides on the EUP).
    m = jnp.max(s, axis=-1, keepdims=True)
    e = jnp.exp(s - m)
    w = e * (1.0 / jnp.sum(e, axis=-1, keepdims=True))

    # TODO(synk): on v5e/v6e a pl.Buffered(3) attn out_spec can hide this store
    # if profiling shows the writeback exposed; left at the default here.
    attn_ref[0, 0] = w.astype(attn_ref.dtype)

    vals = vals_ref[0, 0]
    if compute_dtype is not None:
        w = w.astype(compute_dtype)
        vals = vals.astype(compute_dtype)
    o_ref[0, 0] = jnp.dot(w, vals,
                          preferred_element_type=jnp.float32).astype(o_ref.dtype)


def _vmem_capacity_bytes():
    """Physical VMEM of the local TPU generation; conservative fallback."""
    try:
        info = pltpu.get_tpu_info()
        for attr in ("vmem_capacity_bytes", "vmem_size_bytes", "vmem_bytes"):
            v = getattr(info, attr, None)
            if v:
                return int(v)
    except Exception:
        pass
    return 64 * 1024 * 1024          # assume the smallest (v7x) part


def _budget_bytes(tile, T, E_head):
    """Per-step VMEM: double-buffered pipelined blocks + the in-kernel
    (tile, T) scores/exp/weights/iota intermediates (previously uncounted)."""
    f32 = 4
    return f32 * (
        2 * tile * E_head            # rows block
        + 2 * 2 * T * E_head         # cols + vals blocks
        + 2 * tile * E_head          # output block
        + 2 * tile * T               # attention-weights block
        + 4 * tile * T               # s / e / w / iota intermediates
    )


def _pick_tile(T, E_head, target, limit_cap):
    """Largest multiple-of-8 divisor of T that is <= target and fits the VMEM
    cap; falls back to the smallest divisor (or T itself)."""
    tiles = [t for t in range(8, T + 1, 8) if T % t == 0] or [T]
    best = tiles[0]
    for t in tiles:
        if t <= target and _budget_bytes(t, T, E_head) <= limit_cap:
            best = t
    return best


def multi_headed_attention(Q, K, V, Wq, Wk, Wv, Wo, *, num_heads, masked=None,
                           tile=None, weights_dtype=jnp.float32,
                           compute_dtype=None):
    B, T, E_in = Q.shape
    d_model = Wq.shape[0]
    assert d_model % num_heads == 0
    E_head = d_model // num_heads
    # Required by the reference's `.view(B, T, num_heads, embed_size)`:
    assert E_head == E_in, "reference requires d_model == num_heads * embed_size"

    # d_model-wide projection GEMMs in XLA (full MXU width), split into heads.
    def _project(X, W):
        Xp = jnp.dot(X, W.T)                                       # (B, T, d_model)
        return Xp.reshape(B, T, num_heads, E_head).transpose(0, 2, 1, 3)

    Qh = _project(Q, Wq)
    Kh = _project(K, Wk)
    Vh = _project(V, Wv)

    # '^' softmaxes over the query axis of the *transposed* scores, so there we
    # tile the key axis (swap the roles of Q and K); both paths then share the
    # same grid / VMEM structure.
    rows_arr, cols_arr = (Kh, Qh) if masked == '^' else (Qh, Kh)

    cap = _vmem_capacity_bytes()
    if cap >= (100 << 20):             # 128 MiB parts (v5e / v6e)
        limit_cap, target = 104 << 20, 512
    else:                              # 64 MiB part (v7x): leave headroom
        limit_cap, target = 52 << 20, 256

    if tile is None:
        tile = _pick_tile(T, E_head, target, limit_cap)
    assert T % tile == 0, "tile must divide the sequence length"

    vmem_limit = int(min(max(_budget_bytes(tile, T, E_head) * 5 // 4, 8 << 20),
                         limit_cap))

    scale = 1.0 / math.sqrt(E_head)
    kernel = functools.partial(_attn_kernel, masked=masked, scale=scale,
                               tile=tile, compute_dtype=compute_dtype)

    o_heads, weights = pl.pallas_call(
        kernel,
        out_shape=(
            jax.ShapeDtypeStruct((B, num_heads, T, E_head), jnp.float32),
            jax.ShapeDtypeStruct((B, num_heads, T, T), weights_dtype),
        ),
        grid_spec=pltpu.PrefetchScalarGridSpec(
            num_scalar_prefetch=0,
            grid=(B, num_heads, T // tile),
            in_specs=[
                pl.BlockSpec((1, 1, tile, E_head), lambda b, h, t: (b, h, t, 0)),
                pl.BlockSpec((1, 1, T, E_head), lambda b, h, t: (b, h, 0, 0)),
                pl.BlockSpec((1, 1, T, E_head), lambda b, h, t: (b, h, 0, 0)),
            ],
            out_specs=[
                pl.BlockSpec((1, 1, tile, E_head), lambda b, h, t: (b, h, t, 0)),
                pl.BlockSpec((1, 1, tile, T), lambda b, h, t: (b, h, t, 0)),
            ],
        ),
        compiler_params=pltpu.CompilerParams(
            dimension_semantics=("parallel", "parallel", "parallel"),
            vmem_limit_bytes=vmem_limit),
    )(rows_arr, cols_arr, Vh)

    # Concat-over-heads + W_o as one contraction over (head, E_head) — no
    # explicit transpose pass through HBM.
    out = jnp.einsum('bhtf,dhf->btd', o_heads,
                     Wo.reshape(d_model, num_heads, E_head))
    return out, weights


def _reference(Q, K, V, Wq, Wk, Wv, Wo, *, num_heads, masked=None):
    """Pure-JAX transcription of the PyTorch forward for verification."""
    B, T, E = Q.shape
    d_model = Wq.shape[0]
    Qp, Kp, Vp = Q @ Wq.T, K @ Wk.T, V @ Wv.T
    Qh = Qp.reshape(B, T, num_heads, E).transpose(0, 2, 1, 3)
    Kh = Kp.reshape(B, T, num_heads, E).transpose(0, 2, 1, 3)
    Vh = Vp.reshape(B, T, num_heads, E).transpose(0, 2, 1, 3)
    s = Qh @ Kh.transpose(0, 1, 3, 2) / math.sqrt(E)
    if masked == '^':
        r = jax.lax.broadcasted_iota(jnp.int32, (T, T), 0)
        c = jax.lax.broadcasted_iota(jnp.int32, (T, T), 1)
        s = jnp.where((c > r)[None, None], jnp.float32(-10000000.0), s)
        s = s.transpose(0, 1, 3, 2)
    w = jax.nn.softmax(s, axis=-1)
    o = w @ Vh
    o = o.transpose(0, 2, 1, 3).reshape(B, T, d_model)
    return o @ Wo.T, w


if __name__ == "__main__":
    # Small shapes consistent with the module: d_model = num_heads * embed_size.
    B, T, num_heads, embed = 2, 8, 4, 8
    d_model = num_heads * embed      # 32

    key = jax.random.PRNGKey(0)
    ks = jax.random.split(key, 7)
    Q = jax.random.normal(ks[0], (B, T, embed), dtype=jnp.float32)
    K = jax.random.normal(ks[1], (B, T, embed), dtype=jnp.float32)
    V = jax.random.normal(ks[2], (B, T, embed), dtype=jnp.float32)
    # nn.Linear(in, out, bias=False) weight -> (out, in).
    Wq = jax.random.normal(ks[3], (d_model, embed), dtype=jnp.float32) * 0.1
    Wk = jax.random.normal(ks[4], (d_model, embed), dtype=jnp.float32) * 0.1
    Wv = jax.random.normal(ks[5], (d_model, embed), dtype=jnp.float32) * 0.1
    Wo = jax.random.normal(ks[6], (d_model, d_model), dtype=jnp.float32) * 0.1

    for masked in (None, '^'):
        out, w = multi_headed_attention(Q, K, V, Wq, Wk, Wv, Wo,
                                        num_heads=num_heads, masked=masked)
        jax.block_until_ready((out, w))
        ref_out, ref_w = _reference(Q, K, V, Wq, Wk, Wv, Wo,
                                    num_heads=num_heads, masked=masked)
        np.testing.assert_allclose(np.asarray(out), np.asarray(ref_out),
                                   rtol=1e-5, atol=1e-5)
        np.testing.assert_allclose(np.asarray(w), np.asarray(ref_w),
                                   rtol=1e-5, atol=1e-5)

    # Multi-tile path (exercises the tiled, global-row-indexed '^' mask too).
    T2 = 64
    ks2 = jax.random.split(jax.random.PRNGKey(1), 3)
    Q2 = jax.random.normal(ks2[0], (B, T2, embed), dtype=jnp.float32)
    K2 = jax.random.normal(ks2[1], (B, T2, embed), dtype=jnp.float32)
    V2 = jax.random.normal(ks2[2], (B, T2, embed), dtype=jnp.float32)
    for masked in (None, '^'):
        out, w = multi_headed_attention(Q2, K2, V2, Wq, Wk, Wv, Wo,
                                        num_heads=num_heads, masked=masked,
                                        tile=16)
        jax.block_until_ready((out, w))
        ref_out, ref_w = _reference(Q2, K2, V2, Wq, Wk, Wv, Wo,
                                    num_heads=num_heads, masked=masked)
        np.testing.assert_allclose(np.asarray(out), np.asarray(ref_out),
                                   rtol=1e-5, atol=1e-5)
        np.testing.assert_allclose(np.asarray(w), np.asarray(ref_w),
                                   rtol=1e-5, atol=1e-5)

    print("KERNEL_OK")
</pallas_src>

<mosaic_0001>
module attributes {stable_mosaic.version = 11 : i64} {
  func.func @_attn_kernel(%arg0: i32, %arg1: i32, %arg2: i32, %arg3: memref<1x1x8x8xf32, #tpu.memory_space<vmem>>, %arg4: memref<1x1x8x8xf32, #tpu.memory_space<vmem>>, %arg5: memref<1x1x8x8xf32, #tpu.memory_space<vmem>>, %arg6: memref<1x1x8x8xf32, #tpu.memory_space<vmem>>, %arg7: memref<1x1x8x8xf32, #tpu.memory_space<vmem>>) attributes {dimension_semantics = [#tpu.dimension_semantics<parallel>, #tpu.dimension_semantics<parallel>, #tpu.dimension_semantics<parallel>], iteration_bounds = array<i64: 2, 4, 1>, scalar_prefetch = 0 : i64, scratch_operands = 0 : i64, tpu.core_type = #tpu.core_type<tc>, window_params = [{transform_indices = @transform_0, window_bounds = array<i64: 1, 1, 8, 8>}, {transform_indices = @transform_1, window_bounds = array<i64: 1, 1, 8, 8>}, {transform_indices = @transform_2, window_bounds = array<i64: 1, 1, 8, 8>}, {transform_indices = @transform_3, window_bounds = array<i64: 1, 1, 8, 8>}, {transform_indices = @transform_4, window_bounds = array<i64: 1, 1, 8, 8>}]} {
    %c0 = arith.constant 0 : index
    %c0_0 = arith.constant 0 : index
    %c0_1 = arith.constant 0 : index
    %c0_2 = arith.constant 0 : index
    %0 = vector.load %arg3[%c0, %c0_0, %c0_1, %c0_2] : memref<1x1x8x8xf32, #tpu.memory_space<vmem>>, vector<1x1x8x8xf32>
    %1 = vector.shape_cast %0 : vector<1x1x8x8xf32> to vector<8x8xf32>
    %cst = arith.constant 0.353553385 : f32
    %2 = vector.broadcast %cst : f32 to vector<8x8xf32>
    %3 = arith.mulf %1, %2 : vector<8x8xf32>
    %c0_3 = arith.constant 0 : index
    %c0_4 = arith.constant 0 : index
    %c0_5 = arith.constant 0 : index
    %c0_6 = arith.constant 0 : index
    %4 = vector.load %arg4[%c0_3, %c0_4, %c0_5, %c0_6] : memref<1x1x8x8xf32, #tpu.memory_space<vmem>>, vector<1x1x8x8xf32>
    %5 = vector.shape_cast %4 : vector<1x1x8x8xf32> to vector<8x8xf32>
    %cst_7 = arith.constant dense<0.000000e+00> : vector<8x8xf32>
    %6 = tpu.matmul %3, %5, %cst_7 {dimension_numbers = #tpu.dot_dimension_numbers<[1], [1], [0], [0], [0, 0, 1, 0], [], []>} : vector<8x8xf32>, vector<8x8xf32>, vector<8x8xf32> -> vector<8x8xf32>
    %cst_8 = arith.constant dense<0xFF800000> : vector<8xf32>
    %7 = vector.multi_reduction <maximumf>, %6, %cst_8 [1] : vector<8x8xf32> to vector<8xf32>
    %8 = vector.shape_cast %7 : vector<8xf32> to vector<8x1xf32>
    %9 = vector.broadcast %8 : vector<8x1xf32> to vector<8x8xf32>
    %10 = arith.subf %6, %9 : vector<8x8xf32>
    %11 = math.exp %10 : vector<8x8xf32>
    %cst_9 = arith.constant dense<0.000000e+00> : vector<8xf32>
    %12 = vector.multi_reduction <add>, %11, %cst_9 [1] : vector<8x8xf32> to vector<8xf32>
    %13 = vector.shape_cast %12 : vector<8xf32> to vector<8x1xf32>
    %cst_10 = arith.constant 1.000000e+00 : f32
    %14 = vector.broadcast %cst_10 : f32 to vector<8x1xf32>
    %15 = arith.divf %14, %13 : vector<8x1xf32>
    %16 = vector.broadcast %15 : vector<8x1xf32> to vector<8x8xf32>
    %17 = arith.mulf %11, %16 : vector<8x8xf32>
    %c0_11 = arith.constant 0 : index
    %c0_12 = arith.constant 0 : index
    %c0_13 = arith.constant 0 : index
    %c0_14 = arith.constant 0 : index
    %18 = vector.load %arg7[%c0_11, %c0_12, %c0_13, %c0_14] : memref<1x1x8x8xf32, #tpu.memory_space<vmem>>, vector<1x1x8x8xf32>
    %19 = vector.shape_cast %18 : vector<1x1x8x8xf32> to vector<8x8xf32>
    %20 = vector.shape_cast %17 : vector<8x8xf32> to vector<1x1x8x8xf32>
    tpu.vector_store %arg7[%c0_11, %c0_12, %c0_13, %c0_14], %20 {strides = array<i32>} : memref<1x1x8x8xf32, #tpu.memory_space<vmem>>, vector<1x1x8x8xf32>,
    %c0_15 = arith.constant 0 : index
    %c0_16 = arith.constant 0 : index
    %c0_17 = arith.constant 0 : index
    %c0_18 = arith.constant 0 : index
    %21 = vector.load %arg5[%c0_15, %c0_16, %c0_17, %c0_18] : memref<1x1x8x8xf32, #tpu.memory_space<vmem>>, vector<1x1x8x8xf32>
    %22 = vector.shape_cast %21 : vector<1x1x8x8xf32> to vector<8x8xf32>
    %cst_19 = arith.constant dense<0.000000e+00> : vector<8x8xf32>
    %23 = tpu.matmul %17, %22, %cst_19 {dimension_numbers = #tpu.dot_dimension_numbers<[1], [0], [0], [1], [0, 0, 1, 1], [], []>} : vector<8x8xf32>, vector<8x8xf32>, vector<8x8xf32> -> vector<8x8xf32>
    %c0_20 = arith.constant 0 : index
    %c0_21 = arith.constant 0 : index
    %c0_22 = arith.constant 0 : index
    %c0_23 = arith.constant 0 : index
    %24 = vector.load %arg6[%c0_20, %c0_21, %c0_22, %c0_23] : memref<1x1x8x8xf32, #tpu.memory_space<vmem>>, vector<1x1x8x8xf32>
    %25 = vector.shape_cast %24 : vector<1x1x8x8xf32> to vector<8x8xf32>
    %26 = vector.shape_cast %23 : vector<8x8xf32> to vector<1x1x8x8xf32>
    tpu.vector_store %arg6[%c0_20, %c0_21, %c0_22, %c0_23], %26 {strides = array<i32>} : memref<1x1x8x8xf32, #tpu.memory_space<vmem>>, vector<1x1x8x8xf32>,
    return
  }
  func.func @transform_0(%arg0: i32, %arg1: i32, %arg2: i32) -> (i32, i32, i32, i32) {
    %c0_i32 = arith.constant 0 : i32
    %c0_i32_0 = arith.constant 0 : i32
    return %arg0, %arg1, %arg2, %c0_i32 : i32, i32, i32, i32
  }
  func.func @transform_1(%arg0: i32, %arg1: i32, %arg2: i32) -> (i32, i32, i32, i32) {
    %c0_i32 = arith.constant 0 : i32
    %c0_i32_0 = arith.constant 0 : i32
    %c0_i32_1 = arith.constant 0 : i32
    return %arg0, %arg1, %c0_i32, %c0_i32_0 : i32, i32, i32, i32
  }
  func.func @transform_2(%arg0: i32, %arg1: i32, %arg2: i32) -> (i32, i32, i32, i32) {
    %c0_i32 = arith.constant 0 : i32
    %c0_i32_0 = arith.constant 0 : i32
    %c0_i32_1 = arith.constant 0 : i32
    return %arg0, %arg1, %c0_i32, %c0_i32_0 : i32, i32, i32, i32
  }
  func.func @transform_3(%arg0: i32, %arg1: i32, %arg2: i32) -> (i32, i32, i32, i32) {
    %c0_i32 = arith.constant 0 : i32
    %c0_i32_0 = arith.constant 0 : i32
    return %arg0, %arg1, %arg2, %c0_i32 : i32, i32, i32, i32
  }
  func.func @transform_4(%arg0: i32, %arg1: i32, %arg2: i32) -> (i32, i32, i32, i32) {
    %c0_i32 = arith.constant 0 : i32
    %c0_i32_0 = arith.constant 0 : i32
    return %arg0, %arg1, %arg2, %c0_i32 : i32, i32, i32, i32
  }
}

</mosaic_0001>

<bundles_post_ra>
// kernel: tpu_custom_call.1
= control target key start
LH: loop header
LB: loop body
LE: loop exit
PB: predicated region body
PF: predicated region fallthrough
CT: control target
= control target key end

     0   :  { %s1221_s0 = inlined_call_operand.hbm [shape: f32[2,4,8,8], index: 0, kind: input, shape index: {}]   ;;  %s1222_s1 = inlined_call_operand.hbm [shape: f32[2,4,8,8], index: 1, kind: input, shape index: {}]   ;;  %s1223_s2 = inlined_call_operand.hbm [shape: f32[2,4,8,8], index: 2, kind: input, shape index: {}]   ;;  %s1224_s3 = inlined_call_operand.hbm [shape: f32[2,4,8,8], index: 3, kind: output, shape index: {0}]   ;;  %s1225_s4 = inlined_call_operand.hbm [shape: f32[2,4,8,8], index: 4, kind: output, shape index: {1}]  }
   0x1   :  { %1232 = sst [smem:[#allocation22_spill]] %s1222_s1 }
   0x2   :  { %10 = vsyncpa [#allocation3], 0 }
   0x3   :  { %12 = vsyncpa [#allocation3 + $0x1], 0 }
   0x4   :  { %13 = vsyncpa [#allocation6], 0 }
   0x5   :  { %15 = vsyncpa [#allocation6 + $0x1], 0 }
   0x6   :  { %16 = vsyncpa [#allocation4], 0 }
   0x7   :  { %18 = vsyncpa [#allocation4 + $0x1], 0 }
   0x8   :  { %19 = vsyncpa [#allocation10], 0 }
   0x9   :  { %21 = vsyncpa [#allocation10 + $0x1], 0  ;;  %s1016_s15 = smov 0   ;;  %s1018_s16 = smov 0  }
   0xa   :  { %s1020_s17 = smov 0   ;;  %s1022_s18 = smov 0  }
   0xb   :  { %s1024_s19 = smov 0   ;;  %s1026_s20 = smov 0  }
   0xc   :  { %s1028_s21 = smov 0   ;;  %s1030_s22 = smov 0  }
   0xd LB: > { %1233 = sst [smem:[#allocation15_spill]] %s969_s17  ;;  %s1057_s23 = sadd.s32 4294967295, %s989_s22   ;;  %s989_s22 = sphi %s1030_s22, %s27_s22   ;;  %s985_s21 = sphi %s1028_s21, %s1253_s21   ;;  %s981_s20 = sphi %s1026_s20, %s1252_s20   ;;  %s977_s19 = sphi %s1024_s19, %s1251_s19   ;;  %s973_s18 = sphi %s1022_s18, %s1250_s18   ;;  %s969_s17 = sphi %s1020_s17, %s1249_s17   ;;  %s965_s16 = sphi %s1018_s16, %s1255_s16   ;;  %s961_s15 = sphi %s1016_s15, %s1254_s15  }
   0xe   : > { %1234 = sst [smem:[#allocation16_spill]] %s981_s20  ;;  %s639_s24 = sadd.s32 4294967294, %s989_s22  }
   0xf   : > { %1235 = sst [smem:[#allocation17_spill]] %s985_s21  ;;  %s42_s25 = sadd.s32 1, %s981_s20 }
  0x10   : > { %s46_s26 = sadd.s32 1, %s985_s21  ;;  %p44_p0 = scmp.ge.s32.totalorder %s42_s25, 4 }
  0x11   : > { %s57_s27 = sadd.s32 1, %s969_s17  ;;  %p64_p1 = scmp.ne.s32.totalorder %s969_s17, %s965_s16 }
  0x12   : > { %p65_p2 = scmp.eq.s32.totalorder %s989_s22, 0  ;;  %s1257_s25 = smov (%p44_p0, %s42_s25), 0 }
  0x13   : > { %1236 = sst [smem:[#allocation18_spill]] %s1257_s25  ;;  %s1259_s26 = smov (!%p44_p0, %s46_s26), %s985_s21 }
  0x14   : > { %s51_s28 = ssub.s32 %s981_s20, %s1257_s25  ;;  %p1071_p3 = por %p65_p2, %p64_p1 }
  0x15   : > { %p48_p4 = scmp.ge.s32.totalorder %s1259_s26, 2  ;;  %p70_p5 = scmp.ne.s32.totalorder %s965_s16, %s961_s15 }
  0x16   : > { %p71_p6 = scmp.eq.s32.totalorder %s1057_s23, 0  ;;  %p154_p7 = scmp.eq.s32.totalorder %s1057_s23, 7 }
  0x17   : > { %s1261_s26 = smov (%p48_p4, %s1259_s26), 0  ;;  %p160_p10 = scmp.eq.s32.totalorder %s639_s24, 7 }
  0x18   : > { %1238 = sst [smem:[#allocation19_spill]] %s1261_s26  ;;  %p1081_p8 = por %p71_p6, %p70_p5 }
  0x19   : > { %p1085_p9 = por %p154_p7, %p64_p1  ;;  %s50_s6 = ssub.s32 %s985_s21, %s1261_s26 }
  0x1a   : > { %s52_s7 = sor.u32 %s51_s28, %s50_s6  ;;  %p1091_p12 = por %p160_p10, %p70_p5 }
  0x1b   : > { %p55_p11 = scmp.eq.s32.totalorder %s52_s7, 0  ;;  %p695_p13 = scmp.lt.s32.totalorder %s989_s22, 8 }
  0x1c   : > { %s1241_s8 = scalar_select %p1091_p12, 1, 0 }
  0x1d   : > { %s210_s9 = sand.u32 1, %s969_s17   ;;  %s643_s12 = sshll.u32 %s985_s21, 2 }
  0x1e   : > { %1242 = sst [smem:[#allocation20_spill]] %s1241_s8  ;;  %s642_s11 = sshll.u32 %s210_s9, 3 }
  0x1f   : > { %s1098_s10 = scalar_select %p55_p11, %s969_s17, %s57_s27  }
  0x20   : > { %s219_s13 = sadd.s32 %s981_s20, %s643_s12  ;;  %p1104_p0 = pnand %p695_p13, %p1071_p3 }
  0x21   : > { %1243 = sst [smem:[#allocation21_spill]] %s1098_s10  ;;  %s644_s24 = sshll.u32 %s219_s13, 3 }
  0x22   : > { %s232_s28 = sand.u32 1, %s989_s22   ;;  %s1245_s1 = sld [smem:[#allocation22_spill]] }
  0x23   : > { %s236_s8 = scalar_lea.vmem [#allocation5], %s642_s11  ;;  %s233_s21 = scalar_lea.sflag [#allocation6], %s232_s28 }
  0x24   : > { %s246_s27 = sshll.u32 %s236_s8, 4  ;;  %p651_p1 = scmp.ge.s32.totalorder %s989_s22, 1  ;;  %s247_s27 = int_to_ptr.vmem [resolvable:$true] %s246_s27 }
  0x25   : > { %p272_p2 = scmp.lt.s32.totalorder %s989_s22, 9  ;;  %s221_s6 = scalar_lea.hbm %s1221_s0, %s644_s24 }
  0x26   : > { %s214_s7 = scalar_lea.vmem [#allocation2], %s642_s11  ;;  %s211_s8 = scalar_lea.sflag [#allocation3], %s210_s9 }
  0x27   : > { %p1116_p3 = pnand %p651_p1, %p272_p2  ;;  %s257_s10 = scalar_lea.vmem [#allocation7], %s642_s11 }
  0x28   : > { %s242_s26 = scalar_lea.hbm %s1245_s1, %s644_s24  ;;  %s225_s1 = sshll.u32 %s214_s7, 4  ;;  %s226_s1 = int_to_ptr.vmem [resolvable:$true] %s225_s1 }
  0x29   : > { %s244_s25 = sshll.u32 %s242_s26, 4  ;;  %s223_s26 = sshll.u32 %s221_s6, 4  ;;  %s245_s25 = int_to_ptr.hbm [resolvable:$true] %s244_s25  ;;  %s224_s26 = int_to_ptr.hbm [resolvable:$true] %s223_s26 }
  0x2a   : > { %684 = dma.hbm_to_vmem [thread:$0]  (!%p1104_p0), %s245_s25, 128, %s247_s27, %s233_s21  }
  0x2b   : > { %681 = dma.hbm_to_vmem [thread:$0]  (!%p1104_p0), %s224_s26, 128, %s226_s1, %s211_s8  }
  0x2c   : > { %s263_s27 = scalar_lea.hbm %s1223_s2, %s644_s24  ;;  %s267_s17 = sshll.u32 %s257_s10, 4  ;;  %s268_s17 = int_to_ptr.vmem [resolvable:$true] %s267_s17 }
  0x2d   : > { %s265_s20 = sshll.u32 %s263_s27, 4  ;;  %276 = sbr.rel (%p1116_p3) target bundleno = 577 (0x241), region = 32  ;;  %s266_s20 = int_to_ptr.hbm [resolvable:$true] %s265_s20 }
  0x2e   : > { %687 = dma.hbm_to_vmem [thread:$0]  (!%p1104_p0), %s266_s20, 128, %s268_s17, %s233_s21  }
  0x2f   : > { %s1133_s12 = sand.u32 (!%p1116_p3), 1, %s965_s16  }
  0x30   : > { %s1136_s1 = sshll.u32 (!%p1116_p3), %s1133_s12, 3  ;;  %s279_s9 = scalar_lea.sflag (!%p1116_p3), [#allocation3], %s1133_s12 }
  0x31   : > { %s282_s24 = scalar_lea.vmem (!%p1116_p3), [#allocation2], %s1136_s1 }
  0x32   : > { %944 = dma.done.wait (%p1081_p8), %s279_s9, 128  }
  0x33   : > { %946 = vsyncadd (%p1081_p8), %s279_s9, 4294967168  ;;  %s288_s17 = sand.u32 1, %s1057_s23   ;;  %s292_s21 = scalar_lea.vmem [#allocation5], %s1136_s1 }
  0x34   : > { %s289_s20 = scalar_lea.sflag [#allocation6], %s288_s17 }
  0x35   : > { %948 = dma.done.wait (%p1081_p8), %s289_s20, 256  }
  0x36   : > { %950 = vsyncadd (%p1081_p8), %s289_s20, 4294967040  ;;  %vm346_vm0 = vcmask 64512   ;;  %v345_v0 = vld [vmem:[%s292_s21] sm:$0xff]  ;;  %v343_v1 = vld [vmem:[%s282_s24] sm:$0xff]  ;;  %s302_s23 = scalar_lea.vmem [#allocation7], %s1136_s1  ;;  %s662_s30 = sshll.u32 %s977_s19, 2 }
  0x37   : > { %657 = vmatpush.xpose.msk.msra.mxu0 %vm346_vm0, %v345_v0  ;;  %v344_v2 = vmul.f32 0.35355338, %v343_v1  ;;  %v399_v10 = vld [vmem:[%s302_s23] sm:$0xff]  ;;  %s1157_s10 = sadd.s32 %s973_s18, %s662_s30  ;;  %s342_s19 = scalar_lea.vmem [#allocation9], %s1136_s1 }
  0x38   : > { %418 = vmatpush.msra.mxu1 %v399_v10  ;;  %s663_s11 = sshll.u32 %s1157_s10, 3  ;;  %s462_s18 = sshll.u32 %s342_s19, 4  ;;  %s463_s18 = int_to_ptr.vmem [resolvable:$true] %s462_s18 }
  0x39   : > { %s460_s13 = scalar_lea.hbm %s1225_s4, %s663_s11  ;;  %s430_s26 = scalar_lea.sflag [#allocation10], %s1133_s12 }
  0x3a   : > { %658 = vmatmul.msk.f32.vlgmr.msra.gmra.mxu0 %vm346_vm0, %v344_v2  ;;  %s464_s6 = sshll.u32 %s460_s13, 4  ;;  %s875_s27 = scalar_lea.hbm %s1225_s4, 64  ;;  %s465_s6 = int_to_ptr.hbm [resolvable:$true] %s464_s6 }
  0x3b   : > { %s869_s7 = sshra.s32 %s465_s6, 4  ;;  %s870_s7 = int_to_ptr.hbm [resolvable:$true] %s869_s7 }
  0x3c   : > { %s871_s8 = scalar_lea.hbm %s870_s7, 8  ;;  %p876_p7 = scmp.lt.s32.totalorder %s870_s7, %s1225_s4 }
  0x3d   : > { %p872_p4 = scmp.ne.s32.totalorder %s870_s7, %s871_s8  ;;  %p877_p8 = scmp.lt.s32.totalorder %s875_s27, %s871_s8 }
  0x3f   : > { %p873_p5 = pnand %p872_p4, %p1085_p9  ;;  %p878_p10 = por %p877_p8, %p876_p7 }
  0x41   : > { %p874_p6 = pneg %p873_p5 }
  0x43   : > { %p879_p11 = pnand %p878_p10, %p874_p6 }
  0xb7   : > { %v370_v3 = vpop.f32.mrf.mxu0 }
  0xb8   : > { %v373_v4 = vsel %vm346_vm0, %v370_v3, -inf }
  0xb9   : > { %374 = vmax.xlane.f32.xlu0 %v373_v4 }
 0x12c   : > { %v375_v5 = vpop.xlane.xlu0 %374 }
 0x12d   : > { %v376_v6 = vsub.f32 %v370_v3, %v375_v5 }
 0x12f   : > { %v377_v7 = vmul.f32 1.442695, %v376_v6 }
 0x131   : > { %761 = vpow2.f32 %v377_v7 }
 0x137   : > { %v762_v8 = vpop.eup %761 }
 0x138   : > { %v379_v9 = vsel %vm346_vm0, %v762_v8, 0.0 }
 0x139   : > { %380 = vadd.xlane.f32.xlu0 %v379_v9 }
 0x1ac   : > { %v381_v11 = vpop.xlane.xlu0 %380 }
 0x1ad   : > { %763 = vrcp.f32 %v381_v11  ;;  %v393_v15 = vand.u32 2147483648, %v381_v11  ;;  %v391_v17 = vand.u32 2147483647, %v381_v11  ;;  %vm387_vm2 = vweird.f32 %v381_v11 }
 0x1af   : > { %v394_v19 = vor.u32 1.1754944e-38, %v393_v15  ;;  %vm392_vm4 = vcmp.eq.f32.partialorder %v391_v17, 8.507059e+37 }
 0x1b3   : > { %v764_v12 = vpop.eup %763 }
 0x1b4   : > { %v383_v13 = vmul.f32 %v764_v12, %v381_v11  ;;  %vm388_vm1 = vweird.f32 %v764_v12 }
 0x1b5   : > { %vm389_vm3 = vmor %vm387_vm2, %vm388_vm1 }
 0x1b6   : > { %v384_v14 = vsub.f32 1.0, %v383_v13 }
 0x1b8   : > { %v385_v16 = vmul.f32 %v764_v12, %v384_v14 }
 0x1ba   : > { %v386_v18 = vadd.f32 %v764_v12, %v385_v16 }
 0x1bc   : > { %v390_v20 = vsel %vm389_vm3, %v764_v12, %v386_v18 }
 0x1bd   : > { %v395_v21 = vsel %vm392_vm4, %v394_v19, %v390_v20 }
 0x1be   : > { %v397_v22 = vmul.f32 %v762_v8, %v395_v21 }
 0x1c0   : > { %659 = vmatmul.msk.f32.vlgmr.msra.gmra.mxu1 %vm346_vm0, %v397_v22  ;;  %398 = vst.msk [vmem:[%s342_s19] sm:$0xff] %vm346_vm0, %v397_v22 }
 0x1c1   : > { %882 = shalt.err (!%p879_p11)
}
 0x1c2   : > { %675 = dma.vmem_to_hbm [thread:$0]  (%p1085_p9), %s463_s18, 128, %s465_s6, %s430_s26  }
 0x1c3   : > { %s443_s21 = scalar_lea.hbm %s1224_s3, %s663_s11  ;;  %s335_s23 = scalar_lea.vmem [#allocation8], %s1136_s1 }
 0x1c4   : > { %s445_s30 = sshll.u32 %s335_s23, 4  ;;  %s447_s10 = sshll.u32 %s443_s21, 4  ;;  %s446_s30 = int_to_ptr.vmem [resolvable:$true] %s445_s30  ;;  %s448_s10 = int_to_ptr.hbm [resolvable:$true] %s447_s10 }
 0x1c5   : > { %s425_s14 = scalar_lea.sflag [#allocation4], %s1133_s12  ;;  %s897_s29 = sshra.s32 %s448_s10, 4  ;;  %s898_s29 = int_to_ptr.hbm [resolvable:$true] %s897_s29 }
 0x1c6   : > { %s899_s13 = scalar_lea.hbm %s898_s29, 8  ;;  %s903_s11 = scalar_lea.hbm %s1224_s3, 64 }
 0x1c7   : > { %p900_p13 = scmp.ne.s32.totalorder %s898_s29, %s899_s13  ;;  %p904_p2 = scmp.lt.s32.totalorder %s898_s29, %s1224_s3 }
 0x1c8   : > { %p905_p3 = scmp.lt.s32.totalorder %s903_s11, %s899_s13 }
 0x1c9   : > { %p901_p0 = pnand %p900_p13, %p1085_p9 }
 0x1ca   : > { %p906_p4 = por %p905_p3, %p904_p2 }
 0x1cb   : > { %p902_p1 = pneg %p901_p0 }
 0x1cd   : > { %p907_p5 = pnand %p906_p4, %p902_p1 }
 0x23d   : > { %v420_v23 = vpop.f32.mrf.mxu1 }
 0x23e   : > { %423 = vst.msk [vmem:[%s335_s23] sm:$0xff] %vm346_vm0, %v420_v23 }
 0x23f   : > { %910 = shalt.err (!%p907_p5)
}
 0x240   : > { %674 = dma.vmem_to_hbm [thread:$0]  (%p1085_p9), %s446_s30, 128, %s448_s10, %s425_s14  }
 0x241 PF: > { %p696_p6 = scmp.ge.s32.totalorder %s989_s22, 2  ;;  %s476_s26 = sand.u32 1, %s961_s15  }
 0x242   : > { %s477_s7 = scalar_lea.sflag [#allocation4], %s476_s26 }
 0x243   : > { %p689_p7 = pnand %p696_p6, %p1091_p12 }
 0x245   : > { %p690_p8 = pneg %p689_p7 }
 0x247   : > { %952 = dma.done.wait (%p690_p8), %s477_s7, 128  }
 0x248   : > { %954 = vsyncadd (%p690_p8), %s477_s7, 4294967168  ;;  %s487_s8 = scalar_lea.sflag [#allocation10], %s476_s26 }
 0x249   : > { %956 = dma.done.wait (%p690_p8), %s487_s8, 128  }
 0x24a   : > { %958 = vsyncadd (%p690_p8), %s487_s8, 4294967168  ;;  %s27_s22 = sadd.s32 1, %s989_s22   ;;  %s1248_s5 = sld [smem:[#allocation15_spill]] }
 0x24b   : > { %p24_p10 = scmp.ge.s32.totalorder %s27_s22, 10   ;;  %s1249_s17 = sld [smem:[#allocation21_spill]] }
 0x24c   : > { %s1250_s18 = sld [smem:[#allocation16_spill]]  ;;  %s1254_s15 = smov %s965_s16 }
 0x24d   : > { %s1251_s19 = sld [smem:[#allocation17_spill]]  ;;  %26 = sbr.rel (!%p24_p10) target bundleno = 13 (0xd), region = 118 }
 0x24e   : > { %s1252_s20 = sld [smem:[#allocation18_spill]] }
 0x24f   : > { %s1253_s21 = sld [smem:[#allocation19_spill]] }
 0x250   : > { %s1255_s16 = smov %s1248_s5 }
 0x252   :  { %493 = vsyncpa [#allocation3], 1 }
 0x253   :  { %495 = vsyncpa [#allocation3 + $0x1], 1 }
 0x254   :  { %496 = vsyncpa [#allocation6], 1 }
 0x255   :  { %498 = vsyncpa [#allocation6 + $0x1], 1 }
 0x256   :  { %499 = vsyncpa [#allocation4], 1 }
 0x257   :  { %501 = vsyncpa [#allocation4 + $0x1], 1 }
 0x258   :  { %502 = vsyncpa [#allocation10], 1 }
 0x259   :  { %504 = vsyncpa [#allocation10 + $0x1], 1 }

</bundles_post_ra>
